<compile_context>
chip_gen: v5e
topology: v5e:2x2
jax: 0.10.0
libtpu: 0.0.40
codegen_flags: <defaults>
</compile_context>

<pallas_src>
import functools
import math

import jax
import jax.numpy as jnp
from jax.experimental import pallas as pl
from jax.experimental.pallas import tpu as pltpu


def _series_decomp_kernel(x_ref, res_ref, mean_ref, *,
                          kernel_size, seq_len, channels, use_prefix):
    """One batch-chunk per grid step.

    x_ref    : (Bt, L*C)   flattened (time-major on lanes) input tile
    res_ref  : (Bt, L*C)   residual = x - moving_mean
    mean_ref : (Bt, L*C)   moving_mean
    """
    k = kernel_size
    L, C = seq_len, channels
    p = (k - 1) // 2
    LC = L * C
    bt = x_ref.shape[0]
    inv_k = 1.0 / float(k)

    xf = x_ref[...].astype(jnp.float32)            # single upcast, reused everywhere

    if p == 0:
        mean = xf
    elif use_prefix:
        # Per-channel inclusive prefix sum along time via Hillis-Steele lane
        # rolls: O(log2 L) roll+add steps instead of O(k) shifted adds.
        lane = jax.lax.broadcasted_iota(jnp.int32, (bt, LC), 1)
        s = xf
        d = C                                      # element offset 1,2,4,... (x C lanes)
        while d < LC:
            shifted = pltpu.roll(s, d, axis=1)     # shifted[i] = s[i - d] (wrap masked)
            s = jnp.where(lane >= d, s + shifted, s)
            d *= 2
        # Interior: moving_sum[t] = S[t+p] - S[t-p-1].  Wrapped lanes (first p+1
        # and last p time steps) are overwritten by the edge fixup below.
        s_hi = pltpu.roll(s, (-p * C) % LC, axis=1)        # S[t+p]
        s_lo = pltpu.roll(s, ((p + 1) * C) % LC, axis=1)   # S[t-p-1]
        mean = (s_hi - s_lo) * inv_k
    else:
        # O(k) shifted sum.  Symmetric +/- rolls ride the XLU slot; the circular
        # wrap only affects the first/last p steps, fixed up below.
        acc = xf
        for o in range(1, p + 1):
            acc = acc + pltpu.roll(xf, (o * C) % LC, axis=1)    # x[t - o]
            acc = acc + pltpu.roll(xf, (-o * C) % LC, axis=1)   # x[t + o]
        mean = acc * inv_k

    # Bulk stores (lane-dense; unmasked when L*C is a multiple of 128).
    res_ref[...] = (xf - mean).astype(res_ref.dtype)
    mean_ref[...] = mean.astype(mean_ref.dtype)

    if p == 0:
        return

    # ---- replicate-edge fixup: recompute the few boundary time steps --------
    x0 = xf[:, 0:C]                # first time step  (bt, C)
    xL = xf[:, LC - C:LC]          # last  time step  (bt, C)

    def _emit(t, mean_t):
        lo_l, hi_l = t * C, (t + 1) * C
        mean_ref[:, lo_l:hi_l] = mean_t.astype(mean_ref.dtype)
        res_ref[:, lo_l:hi_l] = (xf[:, lo_l:hi_l] - mean_t).astype(res_ref.dtype)

    fe = min(p + 1, L)             # number of front time steps to recompute
    # Front: running sum over u in [0, min(t+p, L-1)], grown incrementally.
    hi = min(p, L - 1)
    run = x0
    for u in range(1, hi + 1):
        run = run + xf[:, u * C:(u + 1) * C]
    for t in range(fe):
        new_hi = min(t + p, L - 1)
        if new_hi > hi:
            run = run + xf[:, new_hi * C:(new_hi + 1) * C]
            hi = new_hi
        s_t = run
        n_front = p - t                        # clamped-to-front copies of x[0]
        if n_front > 0:
            s_t = s_t + float(n_front) * x0
        n_back = max(t + p - (L - 1), 0)       # clamped-to-back copies of x[L-1]
        if n_back > 0:
            s_t = s_t + float(n_back) * xL
        _emit(t, s_t * inv_k)

    bs = max(L - p, fe)            # first back-edge time step to recompute
    if bs < L:
        cur_lo = max(bs - p, 0)
        run_b = xf[:, cur_lo * C:(cur_lo + 1) * C]
        for u in range(cur_lo + 1, L):
            run_b = run_b + xf[:, u * C:(u + 1) * C]
        for t in range(bs, L):
            new_lo = max(t - p, 0)
            while cur_lo < new_lo:
                run_b = run_b - xf[:, cur_lo * C:(cur_lo + 1) * C]
                cur_lo += 1
            n_back = t + p - (L - 1)           # >= 1 in this range
            _emit(t, (run_b + float(n_back) * xL) * inv_k)


def _sublane_packing(itemsize):
    return {4: 8, 2: 16, 1: 32}.get(int(itemsize), 8)


def _vmem_caps():
    """(tile budget, vmem_limit cap) derived from this generation's VMEM size."""
    try:
        cap = int(pltpu.get_tpu_info().vmem_capacity_bytes)
    except Exception:              # conservative fallback: size for v7x (64 MiB)
        cap = 64 * 1024 * 1024
    return (cap * 3) // 8, cap // 2    # 24/32 MiB on v7x, 48/64 MiB on v5e/v6e


def _tile_vmem_bytes(bt, LC, itemsize):
    pipelined = 2 * 3 * bt * LC * itemsize   # double-buffered: 1 input + 2 outputs
    temps = 3 * bt * LC * 4                  # f32 x / accumulator / roll temp
    return pipelined + temps


def _choose_batch_tile(B, LC, itemsize, budget):
    pack = _sublane_packing(itemsize)        # sublane packing per dtype width
    cands = sorted({d for d in range(pack, B + 1, pack) if B % d == 0} | {B})
    fitting = [bt for bt in cands if _tile_vmem_bytes(bt, LC, itemsize) <= budget]
    if not fitting:
        return min(cands)
    # Prefer >= 4 grid steps (2 pipelined iterations per v7x TensorCore), then
    # >= 2, once a single step already moves a sizeable (>= 1 MiB) tile.
    for min_steps in (4, 2):
        good = [bt for bt in fitting
                if B // bt >= min_steps and bt * LC * itemsize >= (1 << 20)]
        if good:
            return max(good)
    return max(fitting)


def series_decomp(x, kernel_size):
    """Returns (res, moving_mean), both shaped like x = [B, L, C]."""
    assert kernel_size % 2 == 1, \
        "odd kernel_size required for shape-preserving decomposition"
    B, L, C = x.shape
    LC = L * C
    itemsize = jnp.dtype(x.dtype).itemsize

    budget, limit_cap = _vmem_caps()
    Bt = _choose_batch_tile(B, LC, itemsize, budget)
    grid = (B // Bt,)
    # TODO(synk): add a second (time-chunk + halo) grid axis so small-batch
    # workloads still get multi-step pipelining and both v7x TensorCores.

    # Prefix-sum path once O(k) shifted adds would exceed O(log L) scan steps.
    log2L = math.ceil(math.log2(max(L, 2)))
    use_prefix = (kernel_size - 1) > 2 * log2L + 2

    x2 = x.reshape(B, LC)          # free: contiguous reshape, NOT a transpose

    kern = functools.partial(_series_decomp_kernel, kernel_size=kernel_size,
                             seq_len=L, channels=C, use_prefix=use_prefix)

    vmem_need = _tile_vmem_bytes(Bt, LC, itemsize)
    vmem_limit = int(min(limit_cap, max(4 << 20, 2 * vmem_need)))

    ops_per_elem = (2 * log2L + 4) if use_prefix else (kernel_size + 1)
    cost = pl.CostEstimate(
        flops=ops_per_elem * B * L * C,
        transcendentals=0,
        bytes_accessed=3 * B * L * C * itemsize)

    res2, mean2 = pl.pallas_call(
        kern,
        out_shape=(jax.ShapeDtypeStruct((B, LC), x.dtype),
                   jax.ShapeDtypeStruct((B, LC), x.dtype)),
        grid=grid,
        in_specs=[pl.BlockSpec((Bt, LC), lambda b: (b, 0))],
        out_specs=(pl.BlockSpec((Bt, LC), lambda b: (b, 0)),
                   pl.BlockSpec((Bt, LC), lambda b: (b, 0))),
        compiler_params=pltpu.CompilerParams(
            dimension_semantics=("parallel",),
            vmem_limit_bytes=vmem_limit),
        cost_estimate=cost,
    )(x2)

    return res2.reshape(B, L, C), mean2.reshape(B, L, C)


def _series_decomp_ref(x, kernel_size):
    """Pure-JAX reference mirroring the PyTorch forward exactly."""
    pad = (kernel_size - 1) // 2
    front = jnp.repeat(x[:, 0:1, :], pad, axis=1)
    end = jnp.repeat(x[:, -1:, :], pad, axis=1)
    xpad = jnp.concatenate([front, x, end], axis=1)
    L = x.shape[1]
    windows = jnp.stack([xpad[:, j:j + L, :] for j in range(kernel_size)], axis=0)
    mean = jnp.mean(windows, axis=0)
    return x - mean, mean


if __name__ == "__main__":
    key = jax.random.PRNGKey(0)

    # Small kernel_size -> O(k) pltpu.roll path.
    B, L, C, k = 8, 32, 8, 5
    x = jax.random.normal(key, (B, L, C), dtype=jnp.float32)
    res, mean = series_decomp(x, k)
    res = jax.block_until_ready(res)
    mean = jax.block_until_ready(mean)
    res_exp, mean_exp = _series_decomp_ref(x, k)
    assert res.shape == (B, L, C) and mean.shape == (B, L, C)
    assert jnp.allclose(mean, mean_exp, atol=1e-4, rtol=1e-4)
    assert jnp.allclose(res, res_exp, atol=1e-4, rtol=1e-4)

    # Large kernel_size -> prefix-sum (Hillis-Steele) path.
    B2, L2, C2, k2 = 8, 64, 8, 25
    x_big = jax.random.normal(jax.random.PRNGKey(1), (B2, L2, C2), dtype=jnp.float32)
    res2, mean2 = series_decomp(x_big, k2)
    res2 = jax.block_until_ready(res2)
    mean2 = jax.block_until_ready(mean2)
    res2_exp, mean2_exp = _series_decomp_ref(x_big, k2)
    assert jnp.allclose(mean2, mean2_exp, atol=1e-4, rtol=1e-4)
    assert jnp.allclose(res2, res2_exp, atol=1e-4, rtol=1e-4)

    print("KERNEL_OK")
</pallas_src>

<mosaic_0001>
module attributes {stable_mosaic.version = 11 : i64} {
  func.func @_series_decomp_kernel(%arg0: i32, %arg1: memref<8x256xf32, #tpu.memory_space<vmem>>, %arg2: memref<8x256xf32, #tpu.memory_space<vmem>>, %arg3: memref<8x256xf32, #tpu.memory_space<vmem>>) attributes {dimension_semantics = [#tpu.dimension_semantics<parallel>], iteration_bounds = array<i64: 1>, scalar_prefetch = 0 : i64, scratch_operands = 0 : i64, tpu.core_type = #tpu.core_type<tc>, window_params = [{transform_indices = @transform_0, window_bounds = array<i64: 8, 256>}, {transform_indices = @transform_1, window_bounds = array<i64: 8, 256>}, {transform_indices = @transform_2, window_bounds = array<i64: 8, 256>}]} {
    %c0 = arith.constant 0 : index
    %c0_0 = arith.constant 0 : index
    %0 = vector.load %arg1[%c0, %c0_0] : memref<8x256xf32, #tpu.memory_space<vmem>>, vector<8x256xf32>
    %c8_i32 = arith.constant 8 : i32
    %1 = tpu.dynamic_rotate %0 by %c8_i32 dim 1 : vector<8x256xf32>, i32 -> vector<8x256xf32>
    %2 = arith.addf %0, %1 : vector<8x256xf32>
    %c248_i32 = arith.constant 248 : i32
    %3 = tpu.dynamic_rotate %0 by %c248_i32 dim 1 : vector<8x256xf32>, i32 -> vector<8x256xf32>
    %4 = arith.addf %2, %3 : vector<8x256xf32>
    %c16_i32 = arith.constant 16 : i32
    %5 = tpu.dynamic_rotate %0 by %c16_i32 dim 1 : vector<8x256xf32>, i32 -> vector<8x256xf32>
    %6 = arith.addf %4, %5 : vector<8x256xf32>
    %c240_i32 = arith.constant 240 : i32
    %7 = tpu.dynamic_rotate %0 by %c240_i32 dim 1 : vector<8x256xf32>, i32 -> vector<8x256xf32>
    %8 = arith.addf %6, %7 : vector<8x256xf32>
    %cst = arith.constant 2.000000e-01 : f32
    %9 = vector.broadcast %cst : f32 to vector<8x256xf32>
    %10 = arith.mulf %8, %9 : vector<8x256xf32>
    %11 = arith.subf %0, %10 : vector<8x256xf32>
    %c0_1 = arith.constant 0 : index
    %c0_2 = arith.constant 0 : index
    %12 = vector.load %arg2[%c0_1, %c0_2] : memref<8x256xf32, #tpu.memory_space<vmem>>, vector<8x256xf32>
    tpu.vector_store %arg2[%c0_1, %c0_2], %11 {strides = array<i32>} : memref<8x256xf32, #tpu.memory_space<vmem>>, vector<8x256xf32>,
    %c0_3 = arith.constant 0 : index
    %c0_4 = arith.constant 0 : index
    %13 = vector.load %arg3[%c0_3, %c0_4] : memref<8x256xf32, #tpu.memory_space<vmem>>, vector<8x256xf32>
    tpu.vector_store %arg3[%c0_3, %c0_4], %10 {strides = array<i32>} : memref<8x256xf32, #tpu.memory_space<vmem>>, vector<8x256xf32>,
    %14 = vector.extract_strided_slice %0 {offsets = [0, 0], sizes = [8, 8], strides = [1, 1]} : vector<8x256xf32> to vector<8x8xf32>
    %15 = vector.extract_strided_slice %0 {offsets = [0, 248], sizes = [8, 8], strides = [1, 1]} : vector<8x256xf32> to vector<8x8xf32>
    %16 = vector.extract_strided_slice %0 {offsets = [0, 8], sizes = [8, 8], strides = [1, 1]} : vector<8x256xf32> to vector<8x8xf32>
    %17 = arith.addf %14, %16 : vector<8x8xf32>
    %18 = vector.extract_strided_slice %0 {offsets = [0, 16], sizes = [8, 8], strides = [1, 1]} : vector<8x256xf32> to vector<8x8xf32>
    %19 = arith.addf %17, %18 : vector<8x8xf32>
    %cst_5 = arith.constant 2.000000e+00 : f32
    %20 = vector.broadcast %cst_5 : f32 to vector<8x8xf32>
    %21 = arith.mulf %20, %14 : vector<8x8xf32>
    %22 = arith.addf %19, %21 : vector<8x8xf32>
    %cst_6 = arith.constant 2.000000e-01 : f32
    %23 = vector.broadcast %cst_6 : f32 to vector<8x8xf32>
    %24 = arith.mulf %22, %23 : vector<8x8xf32>
    %c0_7 = arith.constant 0 : index
    %c0_8 = arith.constant 0 : index
    %25 = vector.load %arg3[%c0_7, %c0_8] : memref<8x256xf32, #tpu.memory_space<vmem>>, vector<8x8xf32>
    tpu.vector_store %arg3[%c0_7, %c0_8], %24 {strides = array<i32>} : memref<8x256xf32, #tpu.memory_space<vmem>>, vector<8x8xf32>,
    %26 = vector.extract_strided_slice %0 {offsets = [0, 0], sizes = [8, 8], strides = [1, 1]} : vector<8x256xf32> to vector<8x8xf32>
    %27 = arith.subf %26, %24 : vector<8x8xf32>
    %c0_9 = arith.constant 0 : index
    %c0_10 = arith.constant 0 : index
    %28 = vector.load %arg2[%c0_9, %c0_10] : memref<8x256xf32, #tpu.memory_space<vmem>>, vector<8x8xf32>
    tpu.vector_store %arg2[%c0_9, %c0_10], %27 {strides = array<i32>} : memref<8x256xf32, #tpu.memory_space<vmem>>, vector<8x8xf32>,
    %29 = vector.extract_strided_slice %0 {offsets = [0, 24], sizes = [8, 8], strides = [1, 1]} : vector<8x256xf32> to vector<8x8xf32>
    %30 = arith.addf %19, %29 : vector<8x8xf32>
    %cst_11 = arith.constant 1.000000e+00 : f32
    %31 = vector.broadcast %cst_11 : f32 to vector<8x8xf32>
    %32 = arith.mulf %31, %14 : vector<8x8xf32>
    %33 = arith.addf %30, %32 : vector<8x8xf32>
    %cst_12 = arith.constant 2.000000e-01 : f32
    %34 = vector.broadcast %cst_12 : f32 to vector<8x8xf32>
    %35 = arith.mulf %33, %34 : vector<8x8xf32>
    %c0_13 = arith.constant 0 : index
    %c8 = arith.constant 8 : index
    %36 = vector.load %arg3[%c0_13, %c8] : memref<8x256xf32, #tpu.memory_space<vmem>>, vector<8x8xf32>
    tpu.vector_store %arg3[%c0_13, %c8], %35 {strides = array<i32>} : memref<8x256xf32, #tpu.memory_space<vmem>>, vector<8x8xf32>,
    %37 = vector.extract_strided_slice %0 {offsets = [0, 8], sizes = [8, 8], strides = [1, 1]} : vector<8x256xf32> to vector<8x8xf32>
    %38 = arith.subf %37, %35 : vector<8x8xf32>
    %c0_14 = arith.constant 0 : index
    %c8_15 = arith.constant 8 : index
    %39 = vector.load %arg2[%c0_14, %c8_15] : memref<8x256xf32, #tpu.memory_space<vmem>>, vector<8x8xf32>
    tpu.vector_store %arg2[%c0_14, %c8_15], %38 {strides = array<i32>} : memref<8x256xf32, #tpu.memory_space<vmem>>, vector<8x8xf32>,
    %40 = vector.extract_strided_slice %0 {offsets = [0, 32], sizes = [8, 8], strides = [1, 1]} : vector<8x256xf32> to vector<8x8xf32>
    %41 = arith.addf %30, %40 : vector<8x8xf32>
    %cst_16 = arith.constant 2.000000e-01 : f32
    %42 = vector.broadcast %cst_16 : f32 to vector<8x8xf32>
    %43 = arith.mulf %41, %42 : vector<8x8xf32>
    %c0_17 = arith.constant 0 : index
    %c16 = arith.constant 16 : index
    %44 = vector.load %arg3[%c0_17, %c16] : memref<8x256xf32, #tpu.memory_space<vmem>>, vector<8x8xf32>
    tpu.vector_store %arg3[%c0_17, %c16], %43 {strides = array<i32>} : memref<8x256xf32, #tpu.memory_space<vmem>>, vector<8x8xf32>,
    %45 = vector.extract_strided_slice %0 {offsets = [0, 16], sizes = [8, 8], strides = [1, 1]} : vector<8x256xf32> to vector<8x8xf32>
    %46 = arith.subf %45, %43 : vector<8x8xf32>
    %c0_18 = arith.constant 0 : index
    %c16_19 = arith.constant 16 : index
    %47 = vector.load %arg2[%c0_18, %c16_19] : memref<8x256xf32, #tpu.memory_space<vmem>>, vector<8x8xf32>
    tpu.vector_store %arg2[%c0_18, %c16_19], %46 {strides = array<i32>} : memref<8x256xf32, #tpu.memory_space<vmem>>, vector<8x8xf32>,
    %48 = vector.extract_strided_slice %0 {offsets = [0, 224], sizes = [8, 8], strides = [1, 1]} : vector<8x256xf32> to vector<8x8xf32>
    %49 = vector.extract_strided_slice %0 {offsets = [0, 232], sizes = [8, 8], strides = [1, 1]} : vector<8x256xf32> to vector<8x8xf32>
    %50 = arith.addf %48, %49 : vector<8x8xf32>
    %51 = vector.extract_strided_slice %0 {offsets = [0, 240], sizes = [8, 8], strides = [1, 1]} : vector<8x256xf32> to vector<8x8xf32>
    %52 = arith.addf %50, %51 : vector<8x8xf32>
    %53 = vector.extract_strided_slice %0 {offsets = [0, 248], sizes = [8, 8], strides = [1, 1]} : vector<8x256xf32> to vector<8x8xf32>
    %54 = arith.addf %52, %53 : vector<8x8xf32>
    %cst_20 = arith.constant 1.000000e+00 : f32
    %55 = vector.broadcast %cst_20 : f32 to vector<8x8xf32>
    %56 = arith.mulf %55, %15 : vector<8x8xf32>
    %57 = arith.addf %54, %56 : vector<8x8xf32>
    %cst_21 = arith.constant 2.000000e-01 : f32
    %58 = vector.broadcast %cst_21 : f32 to vector<8x8xf32>
    %59 = arith.mulf %57, %58 : vector<8x8xf32>
    %c0_22 = arith.constant 0 : index
    %c240 = arith.constant 240 : index
    %60 = vector.load %arg3[%c0_22, %c240] : memref<8x256xf32, #tpu.memory_space<vmem>>, vector<8x8xf32>
    tpu.vector_store %arg3[%c0_22, %c240], %59 {strides = array<i32>} : memref<8x256xf32, #tpu.memory_space<vmem>>, vector<8x8xf32>,
    %61 = vector.extract_strided_slice %0 {offsets = [0, 240], sizes = [8, 8], strides = [1, 1]} : vector<8x256xf32> to vector<8x8xf32>
    %62 = arith.subf %61, %59 : vector<8x8xf32>
    %c0_23 = arith.constant 0 : index
    %c240_24 = arith.constant 240 : index
    %63 = vector.load %arg2[%c0_23, %c240_24] : memref<8x256xf32, #tpu.memory_space<vmem>>, vector<8x8xf32>
    tpu.vector_store %arg2[%c0_23, %c240_24], %62 {strides = array<i32>} : memref<8x256xf32, #tpu.memory_space<vmem>>, vector<8x8xf32>,
    %64 = vector.extract_strided_slice %0 {offsets = [0, 224], sizes = [8, 8], strides = [1, 1]} : vector<8x256xf32> to vector<8x8xf32>
    %65 = arith.subf %54, %64 : vector<8x8xf32>
    %cst_25 = arith.constant 2.000000e+00 : f32
    %66 = vector.broadcast %cst_25 : f32 to vector<8x8xf32>
    %67 = arith.mulf %66, %15 : vector<8x8xf32>
    %68 = arith.addf %65, %67 : vector<8x8xf32>
    %cst_26 = arith.constant 2.000000e-01 : f32
    %69 = vector.broadcast %cst_26 : f32 to vector<8x8xf32>
    %70 = arith.mulf %68, %69 : vector<8x8xf32>
    %c0_27 = arith.constant 0 : index
    %c248 = arith.constant 248 : index
    %71 = vector.load %arg3[%c0_27, %c248] : memref<8x256xf32, #tpu.memory_space<vmem>>, vector<8x8xf32>
    tpu.vector_store %arg3[%c0_27, %c248], %70 {strides = array<i32>} : memref<8x256xf32, #tpu.memory_space<vmem>>, vector<8x8xf32>,
    %72 = vector.extract_strided_slice %0 {offsets = [0, 248], sizes = [8, 8], strides = [1, 1]} : vector<8x256xf32> to vector<8x8xf32>
    %73 = arith.subf %72, %70 : vector<8x8xf32>
    %c0_28 = arith.constant 0 : index
    %c248_29 = arith.constant 248 : index
    %74 = vector.load %arg2[%c0_28, %c248_29] : memref<8x256xf32, #tpu.memory_space<vmem>>, vector<8x8xf32>
    tpu.vector_store %arg2[%c0_28, %c248_29], %73 {strides = array<i32>} : memref<8x256xf32, #tpu.memory_space<vmem>>, vector<8x8xf32>,
    return
  }
  func.func @transform_0(%arg0: i32) -> (i32, i32) {
    %c0_i32 = arith.constant 0 : i32
    %c0_i32_0 = arith.constant 0 : i32
    return %arg0, %c0_i32 : i32, i32
  }
  func.func @transform_1(%arg0: i32) -> (i32, i32) {
    %c0_i32 = arith.constant 0 : i32
    %c0_i32_0 = arith.constant 0 : i32
    return %arg0, %c0_i32 : i32, i32
  }
  func.func @transform_2(%arg0: i32) -> (i32, i32) {
    %c0_i32 = arith.constant 0 : i32
    %c0_i32_0 = arith.constant 0 : i32
    return %arg0, %c0_i32 : i32, i32
  }
}

</mosaic_0001>

<bundles_post_ra>
// kernel: tpu_custom_call.1
= control target key start
LH: loop header
LB: loop body
LE: loop exit
PB: predicated region body
PF: predicated region fallthrough
CT: control target
= control target key end

     0   :  { %8 = vsyncpa [#allocation3], 0  ;;  %s352_s0 = inlined_call_operand.hbm [shape: f32[8,256], index: 0, kind: input, shape index: {}]   ;;  %s353_s1 = inlined_call_operand.hbm [shape: f32[8,256], index: 1, kind: output, shape index: {0}]   ;;  %s354_s2 = inlined_call_operand.hbm [shape: f32[8,256], index: 2, kind: output, shape index: {1}]  }
   0x1   :  { %9 = vsyncpa [#allocation4], 0 }
   0x2   :  { %10 = vsyncpa [#allocation7], 0  ;;  %s16_s11 = sshll.u32 %s352_s0, 4  ;;  %s277_s12 = smov [#allocation2]   ;;  %s17_s11 = int_to_ptr.hbm [resolvable:$true] %s16_s11 }
   0x3   :  { %s18_s13 = sshll.u32 %s277_s12, 4  ;;  %s19_s13 = int_to_ptr.vmem [resolvable:$true] %s18_s13 }
   0x4   :  { %21 = dma.hbm_to_vmem [thread:$0]  %s17_s11, 256, %s19_s13, [#allocation3]  }
   0x5   :  { %271 = dma.done.wait [#allocation3], 256  }
   0x6   :  { %272 = vsyncadd [#allocation3], 4294967040  ;;  %v305_v0 = vld [vmem:[#allocation2 + $0x8] sm:$0xff]  ;;  %s278_s14 = smov 112   ;;  %s279_s15 = smov 120   ;;  %v310_v1 = vld [vmem:[#allocation2] sm:$0xff]  ;;  %v32_v20 = vlaneseq }
   0x7   :  { %122 = vrot.lane.b32.xlu1 %v305_v0, %s278_s14  ;;  %118 = vrot.lane.b32.xlu0 %v305_v0, %s279_s15  ;;  %s280_s16 = smov 104   ;;  %v141_v2 = vmul.f32 2.0, %v305_v0  ;;  %s281_s0 = smov 96   ;;  %v83_v44 = vmul.f32 2.0, %v310_v1  ;;  %vm86_vm4 = vcmask 64512   ;;  %vm136_vm5 = vcmask 982912  }
   0x8   :  { %126 = vrot.lane.b32.xlu2 %v305_v0, %s280_s16  ;;  %s282_s17 = smov 8   ;;  %s283_s18 = smov 16   ;;  %v33_v26 = vand.u32 127, %v32_v20  ;;  %vm100_vm6 = vcmask 130112   ;;  %vm113_vm7 = vcmask 195712   ;;  %vm152_vm8 = vcmask 1048512  }
   0x9   :  { %s284_s19 = smov 24   ;;  %s285_s20 = smov [#allocation6]  }
   0xa   :  { %vm34_vm0 = vcmp.lt.s32.totalorder %v33_v26, 8  ;;  %vm43_vm1 = vcmp.lt.s32.totalorder %v33_v26, 120  ;;  %vm52_vm2 = vcmp.lt.s32.totalorder %v33_v26, 16  ;;  %vm61_vm3 = vcmp.lt.s32.totalorder %v33_v26, 112  ;;  %s172_s21 = sshll.u32 %s285_s20, 4  ;;  %s174_s24 = sshll.u32 %s354_s2, 4  ;;  %s173_s21 = int_to_ptr.vmem [resolvable:$true] %s172_s21  ;;  %s175_s24 = int_to_ptr.hbm [resolvable:$true] %s174_s24 }
   0xb   :  { %s286_s25 = smov [#allocation5]   ;;  %s163_s29 = sshll.u32 %s353_s1, 4  ;;  %s164_s29 = int_to_ptr.hbm [resolvable:$true] %s163_s29 }
   0xc   :  { %s161_s26 = sshll.u32 %s286_s25, 4  ;;  %s162_s26 = int_to_ptr.vmem [resolvable:$true] %s161_s26 }
   0xf   :  { %79 = vrot.lane.b32.xlu1 %v310_v1, %s278_s14  ;;  %75 = vrot.lane.b32.xlu0 %v310_v1, %s279_s15 }
  0x10   :  { %90 = vrot.lane.b32.xlu2 %v310_v1, %s280_s16 }
  0x17   :  { %143 = vrot.lane.b32.xlu1 %v141_v2, %s280_s16  ;;  %104 = vrot.lane.b32.xlu0 %v310_v1, %s281_s0 }
  0x18   :  { %28 = vrot.lane.b32.xlu2 %v310_v1, %s282_s17 }
  0x1f   :  { %30 = vrot.lane.b32.xlu0 %v305_v0, %s282_s17  ;;  %39 = vrot.lane.b32.xlu1 %v310_v1, %s279_s15 }
  0x20   :  { %41 = vrot.lane.b32.xlu2 %v305_v0, %s279_s15 }
  0x27   :  { %48 = vrot.lane.b32.xlu0 %v310_v1, %s283_s18  ;;  %50 = vrot.lane.b32.xlu1 %v305_v0, %s283_s18 }
  0x28   :  { %57 = vrot.lane.b32.xlu2 %v310_v1, %s278_s14 }
  0x2f   :  { %59 = vrot.lane.b32.xlu0 %v305_v0, %s278_s14 }
  0x62   :  { %v127_v3 = vpop.permute.xlu2 %126 }
  0x6a   :  { %v91_v14 = vpop.permute.xlu2 %90 }
  0x72   :  { %v29_v23 = vpop.permute.xlu2 %28 }
  0x79   :  { %v123_v4 = vpop.permute.xlu1 %122  ;;  %v119_v5 = vpop.permute.xlu0 %118 }
  0x7a   :  { %v121_v6 = vadd.f32 %v119_v5, %v305_v0  ;;  %v42_v33 = vpop.permute.xlu2 %41 }
  0x7c   :  { %v125_v7 = vadd.f32 %v123_v4, %v121_v6 }
  0x7e   :  { %v129_v8 = vadd.f32 %v127_v3, %v125_v7 }
  0x80   :  { %v130_v9 = vadd.f32 %v129_v8, %v127_v3  ;;  %v140_v24 = vsub.f32 %v129_v8, %v305_v0 }
  0x81   :  { %v80_v10 = vpop.permute.xlu1 %79  ;;  %v76_v11 = vpop.permute.xlu0 %75 }
  0x82   :  { %v131_v12 = vmul.f32 0.2, %v130_v9  ;;  %v78_v13 = vadd.f32 %v76_v11, %v310_v1  ;;  %v58_v47 = vpop.permute.xlu2 %57 }
  0x84   :  { %133 = vrot.lane.b32.xlu2 %v131_v12, %s283_s18  ;;  %v82_v15 = vadd.f32 %v80_v10, %v78_v13 }
  0x86   :  { %v93_v16 = vadd.f32 %v91_v14, %v82_v15  ;;  %v84_v48 = vadd.f32 %v83_v44, %v82_v15 }
  0x88   :  { %v94_v17 = vadd.f32 %v93_v16, %v310_v1  ;;  %v85_v54 = vmul.f32 0.2, %v84_v48 }
  0x89   :  { %v144_v18 = vpop.permute.xlu1 %143  ;;  %v105_v19 = vpop.permute.xlu0 %104 }
  0x8a   :  { %v95_v21 = vmul.f32 0.2, %v94_v17  ;;  %v107_v22 = vadd.f32 %v105_v19, %v93_v16  ;;  %v146_v27 = vadd.f32 %v144_v18, %v140_v24  ;;  %v88_v59 = vsub.f32 %v310_v1, %v85_v54 }
  0x8c   :  { %v108_v25 = vmul.f32 0.2, %v107_v22  ;;  %97 = vrot.lane.b32.xlu1 %v95_v21, %s282_s17  ;;  %v147_v30 = vmul.f32 0.2, %v146_v27 }
  0x8e   :  { %110 = vrot.lane.b32.xlu0 %v108_v25, %s283_s18 }
  0x91   :  { %v31_v28 = vpop.permute.xlu0 %30  ;;  %v40_v29 = vpop.permute.xlu1 %39 }
  0x92   :  { %v35_v31 = vsel %vm34_vm0, %v29_v23, %v31_v28  ;;  %v36_v32 = vsel %vm34_vm0, %v31_v28, %v29_v23  ;;  %v44_v36 = vsel %vm43_vm1, %v40_v29, %v42_v33  ;;  %v45_v37 = vsel %vm43_vm1, %v42_v33, %v40_v29 }
  0x93   :  { %v37_v34 = vadd.f32 %v36_v32, %v310_v1  ;;  %v38_v35 = vadd.f32 %v35_v31, %v305_v0 }
  0x94   :  { %149 = vrot.lane.b32.xlu1 %v147_v30, %s284_s19 }
  0x95   :  { %v46_v40 = vadd.f32 %v44_v36, %v37_v34  ;;  %v47_v41 = vadd.f32 %v45_v37, %v38_v35 }
  0x99   :  { %v49_v38 = vpop.permute.xlu0 %48  ;;  %v51_v39 = vpop.permute.xlu1 %50 }
  0x9a   :  { %v53_v42 = vsel %vm52_vm2, %v49_v38, %v51_v39  ;;  %v54_v43 = vsel %vm52_vm2, %v51_v39, %v49_v38 }
  0x9b   :  { %v55_v45 = vadd.f32 %v54_v43, %v46_v40  ;;  %v56_v46 = vadd.f32 %v53_v42, %v47_v41 }
  0xa1   :  { %v60_v49 = vpop.permute.xlu0 %59 }
  0xa2   :  { %v62_v50 = vsel %vm61_vm3, %v58_v47, %v60_v49  ;;  %v63_v51 = vsel %vm61_vm3, %v60_v49, %v58_v47 }
  0xa3   :  { %v64_v52 = vadd.f32 %v62_v50, %v55_v45  ;;  %v65_v53 = vadd.f32 %v63_v51, %v56_v46 }
  0xa5   :  { %v66_v55 = vmul.f32 0.2, %v64_v52  ;;  %v67_v56 = vmul.f32 0.2, %v65_v53 }
  0xa7   :  { %v68_v57 = vsub.f32 %v310_v1, %v66_v55  ;;  %v69_v58 = vsub.f32 %v305_v0, %v67_v56  ;;  %72 = vst [vmem:[#allocation6] sm:$0xff] %v66_v55 }
  0xa8   :  { %73 = vst [vmem:[#allocation6 + $0x8] sm:$0xff] %v67_v56 }
  0xa9   :  { %70 = vst [vmem:[#allocation5] sm:$0xff] %v68_v57 }
  0xaa   :  { %71 = vst [vmem:[#allocation5 + $0x8] sm:$0xff] %v69_v58 }
  0xab   :  { %89 = vst.msk [vmem:[#allocation5] sm:$0xff] %vm86_vm4, %v88_v59 }
  0xac   :  { %87 = vst.msk [vmem:[#allocation6] sm:$0xff] %vm86_vm4, %v85_v54 }
  0xde   :  { %v134_v60 = vpop.permute.xlu2 %133 }
  0xdf   :  { %137 = vst.msk [vmem:[#allocation6 + $0x8] sm:$0xff] %vm136_vm5, %v134_v60  ;;  %v138_v61 = vsub.f32 %v305_v0, %v134_v60 }
  0xe1   :  { %139 = vst.msk [vmem:[#allocation5 + $0x8] sm:$0xff] %vm136_vm5, %v138_v61 }
  0xfe   :  { %v98_v62 = vpop.permute.xlu1 %97 }
  0xff   :  { %101 = vst.msk [vmem:[#allocation6] sm:$0xff] %vm100_vm6, %v98_v62  ;;  %v102_v63 = vsub.f32 %v310_v1, %v98_v62 }
 0x100   :  { %v111_v2 = vpop.permute.xlu0 %110 }
 0x101   :  { %103 = vst.msk [vmem:[#allocation5] sm:$0xff] %vm100_vm6, %v102_v63  ;;  %v115_v3 = vsub.f32 %v310_v1, %v111_v2 }
 0x102   :  { %114 = vst.msk [vmem:[#allocation6] sm:$0xff] %vm113_vm7, %v111_v2 }
 0x103   :  { %116 = vst.msk [vmem:[#allocation5] sm:$0xff] %vm113_vm7, %v115_v3 }
 0x106   :  { %v150_v4 = vpop.permute.xlu1 %149 }
 0x107   :  { %153 = vst.msk [vmem:[#allocation6 + $0x8] sm:$0xff] %vm152_vm8, %v150_v4  ;;  %v154_v1 = vsub.f32 %v305_v0, %v150_v4 }
 0x108   :  { %177 = dma.vmem_to_hbm [thread:$0]  %s173_s21, 256, %s175_s24, [#allocation7]  }
 0x109   :  { %155 = vst.msk [vmem:[#allocation5 + $0x8] sm:$0xff] %vm152_vm8, %v154_v1 }
 0x10a   :  { %166 = dma.vmem_to_hbm [thread:$0]  %s162_s26, 256, %s164_s29, [#allocation4]  }
 0x10b   :  { %273 = dma.done.wait [#allocation4], 256  }
 0x10c   :  { %274 = vsyncadd [#allocation4], 4294967040 }
 0x10d   :  { %275 = dma.done.wait [#allocation7], 256  }
 0x10e   :  { %276 = vsyncadd [#allocation7], 4294967040 }
 0x10f   :  { %186 = vsyncpa [#allocation3], 1 }
 0x110   :  { %187 = vsyncpa [#allocation4], 1 }
 0x111   :  { %188 = vsyncpa [#allocation7], 1 }

</bundles_post_ra>
